<compile_context>
chip_gen: v7x
topology: tpu7x:2x2x1
jax: 0.10.0
libtpu: 0.0.40
codegen_flags: <defaults>
</compile_context>

<pallas_src>
import jax
import jax.numpy as jnp
import numpy as np
from jax.experimental import pallas as pl
from jax.experimental.pallas import tpu as pltpu

VMEM_SPEC = pl.BlockSpec(memory_space=pltpu.MemorySpace.VMEM)


def up_fused_kernel(x1_ref, x2_ref, wtT_ref, bt_ref,
                    w1f_ref, b1_ref, g1_ref, be1_ref,
                    w2f_ref, b2_ref, g2_ref, be2_ref,
                    o_ref, xpad_ref, hpad_ref):
    """Fused Up block, NCL layout (length on lanes, channels on sublanes).

    x1_ref : (B, Cin, L)        x2_ref : (B, Cout, T),  T = 2L
    wtT_ref: (2*Cout, Cin)      rows [0:Cout] = Wt[:,:,0].T, rows [Cout:] = Wt[:,:,1].T
    w1f_ref: (Cout, 5*2*Cout)   folded conv1 weight, [o, k*2C + i] = w1[o, i, k]
    w2f_ref: (Cout, 5*Cout)     folded conv2 weight
    bt/b/g/be: (Cout, 1)
    o_ref  : (B, Cout, T)
    xpad_ref: (B, 2*Cout, T+4)  VMEM scratch, zero lane-halos of 2 on each side
    hpad_ref: (B, Cout,  T+4)   VMEM scratch
    """
    B, Cin, L = x1_ref.shape
    _, Cout, T = o_ref.shape
    C1 = 2 * Cout
    eps = 1e-5
    inv_n = 1.0 / float(B * T)
    f32 = jnp.float32

    # ----- hoisted weight/affine loads & broadcasts (done once, outside any loop) ----
    wtT = jnp.broadcast_to(wtT_ref[...], (B, C1, Cin))
    w1f = jnp.broadcast_to(w1f_ref[...], (B, Cout, 5 * C1))
    w2f = jnp.broadcast_to(w2f_ref[...], (B, Cout, 5 * Cout))
    bt = bt_ref[...]
    b1, g1, be1 = b1_ref[...], g1_ref[...], be1_ref[...]
    b2, g2, be2 = b2_ref[...], g2_ref[...], be2_ref[...]

    # Lane-selection matrices for the stride-2 interleave (built from iota, no HBM).
    li = jax.lax.broadcasted_iota(jnp.int32, (L, T), 0)
    ti = jax.lax.broadcasted_iota(jnp.int32, (L, T), 1)
    p_even = jnp.broadcast_to((ti == 2 * li).astype(f32), (B, L, T))
    p_odd = jnp.broadcast_to((ti == 2 * li + 1).astype(f32), (B, L, T))

    # ----- ConvTranspose1d(k=2, s=2): one batched matmul + selection-matmul interleave
    evod = jnp.einsum('boc,bcl->bol', wtT, x1_ref[...].astype(f32),
                      preferred_element_type=f32)                    # (B, 2*Cout, L)
    up = (jnp.einsum('bol,blt->bot', evod[:, :Cout, :], p_even,
                     preferred_element_type=f32)
          + jnp.einsum('bol,blt->bot', evod[:, Cout:, :], p_odd,
                       preferred_element_type=f32)
          + bt)                                                      # (B, Cout, T)

    # ----- concat(up, x2) written into the zero-halo padded scratch ------------------
    xpad_ref[...] = jnp.zeros_like(xpad_ref)
    xpad_ref[:, :Cout, 2:T + 2] = up
    xpad_ref[:, Cout:, 2:T + 2] = x2_ref[...].astype(f32)

    # ----- Conv1d #1 (k=5, p=2): fold 5 taps -> single batched matmul with K = 5*2C --
    xp = xpad_ref[...]
    xcat = jnp.concatenate([xp[:, :, k:k + T] for k in range(5)], axis=1)  # (B,5*2C,T)
    h = jnp.einsum('bos,bst->bot', w1f, xcat, preferred_element_type=f32) + b1
    h = jnp.maximum(h, 0.0)                                           # (B, Cout, T)

    # ----- BatchNorm1d #1: single-pass biased stats over (B, T), fused scale/shift ---
    s1 = jnp.sum(jnp.sum(h, axis=2, keepdims=True), axis=0, keepdims=True)
    q1 = jnp.sum(jnp.sum(h * h, axis=2, keepdims=True), axis=0, keepdims=True)
    mean1 = s1 * inv_n
    var1 = q1 * inv_n - mean1 * mean1
    sc1 = jax.lax.rsqrt(var1 + eps) * g1                              # (1, Cout, 1)
    sh1 = be1 - mean1 * sc1                                           # (1, Cout, 1)
    h = h * sc1 + sh1

    # ----- Conv1d #2 (k=5, p=2): same folded-tap single matmul, K = 5*Cout -----------
    hpad_ref[...] = jnp.zeros_like(hpad_ref)
    hpad_ref[:, :, 2:T + 2] = h
    hp = hpad_ref[...]
    hcat = jnp.concatenate([hp[:, :, k:k + T] for k in range(5)], axis=1)  # (B,5*C,T)
    y = jnp.einsum('bos,bst->bot', w2f, hcat, preferred_element_type=f32) + b2
    y = jnp.maximum(y, 0.0)

    # ----- BatchNorm1d #2 -------------------------------------------------------------
    s2 = jnp.sum(jnp.sum(y, axis=2, keepdims=True), axis=0, keepdims=True)
    q2 = jnp.sum(jnp.sum(y * y, axis=2, keepdims=True), axis=0, keepdims=True)
    mean2 = s2 * inv_n
    var2 = q2 * inv_n - mean2 * mean2
    sc2 = jax.lax.rsqrt(var2 + eps) * g2
    sh2 = be2 - mean2 * sc2
    o_ref[...] = (y * sc2 + sh2).astype(o_ref.dtype)


def up_forward(x1, x2, p):
    """x1: (B, Cin, L), x2: (B, Cout, 2L), both NCL.  Returns (B, Cout, 2L) NCL."""
    B, Cin, L = x1.shape
    Cout = p["wt"].shape[1]
    T = 2 * L
    C1 = 2 * Cout

    # ConvTranspose1d weight (Cin, Cout, 2) -> (2*Cout, Cin): even tap rows, odd tap rows.
    wtT = jnp.concatenate([p["wt"][:, :, 0].T, p["wt"][:, :, 1].T], axis=0)
    bt = p["bt"].reshape(Cout, 1)
    # Conv1d weights (O, I, K) -> folded (O, K*I) so one matmul covers all 5 taps.
    w1f = jnp.transpose(p["w1"], (0, 2, 1)).reshape(Cout, 5 * C1)
    w2f = jnp.transpose(p["w2"], (0, 2, 1)).reshape(Cout, 5 * Cout)
    b1 = p["b1"].reshape(Cout, 1)
    g1 = p["g1"].reshape(Cout, 1)
    be1 = p["be1"].reshape(Cout, 1)
    b2 = p["b2"].reshape(Cout, 1)
    g2 = p["g2"].reshape(Cout, 1)
    be2 = p["be2"].reshape(Cout, 1)

    # Single fused invocation; BatchNorm needs global (B, L) stats so no length tiling
    # at these shapes.  (For large L: tile length + two-pass accumulate/normalize BN.)
    return pl.pallas_call(
        up_fused_kernel,
        out_shape=jax.ShapeDtypeStruct((B, Cout, T), jnp.float32),
        in_specs=[VMEM_SPEC] * 12,
        out_specs=VMEM_SPEC,
        scratch_shapes=[
            pltpu.VMEM((B, C1, T + 4), jnp.float32),     # padded concat(up, x2)
            pltpu.VMEM((B, Cout, T + 4), jnp.float32),   # padded hidden activation
        ],
    )(x1, x2, wtT, bt, w1f, b1, g1, be1, w2f, b2, g2, be2)


def up_reference(x1, x2, p):
    """Pure-JAX reference matching torch semantics (train-mode BatchNorm)."""
    B, Cin, L = x1.shape
    Cout = p["wt"].shape[1]
    even = jnp.einsum("bct,cd->bdt", x1, p["wt"][:, :, 0])
    odd = jnp.einsum("bct,cd->bdt", x1, p["wt"][:, :, 1])
    up = jnp.stack([even, odd], axis=-1).reshape(B, Cout, 2 * L) + p["bt"][None, :, None]
    x = jnp.concatenate([up, x2], axis=1)

    def conv1d(x, w, b):
        y = jax.lax.conv_general_dilated(
            x, w, window_strides=(1,), padding=[(2, 2)],
            dimension_numbers=("NCH", "OIH", "NCH"))
        return y + b[None, :, None]

    def bn(x, g, be):
        mean = jnp.mean(x, axis=(0, 2), keepdims=True)
        var = jnp.mean((x - mean) ** 2, axis=(0, 2), keepdims=True)
        return (x - mean) * jax.lax.rsqrt(var + 1e-5) * g[None, :, None] + be[None, :, None]

    h = bn(jnp.maximum(conv1d(x, p["w1"], p["b1"]), 0.0), p["g1"], p["be1"])
    return bn(jnp.maximum(conv1d(h, p["w2"], p["b2"]), 0.0), p["g2"], p["be2"])


if __name__ == "__main__":
    B, Cin, Cout, L = 2, 8, 8, 16
    keys = jax.random.split(jax.random.PRNGKey(0), 14)

    x1 = jax.random.normal(keys[0], (B, Cin, L), jnp.float32)          # NCL
    x2 = jax.random.normal(keys[1], (B, Cout, 2 * L), jnp.float32)     # NCL

    p = {
        # ConvTranspose1d weight: (in_ch, out_ch, k=2)
        "wt": jax.random.normal(keys[2], (Cin, Cout, 2), jnp.float32) / (Cin ** 0.5),
        "bt": 0.1 * jax.random.normal(keys[3], (Cout,), jnp.float32),
        # Conv1d #1 weight: (out_ch, 2*out_ch, 5)
        "w1": jax.random.normal(keys[4], (Cout, 2 * Cout, 5), jnp.float32) / ((2 * Cout * 5) ** 0.5),
        "b1": 0.1 * jax.random.normal(keys[5], (Cout,), jnp.float32),
        "g1": 1.0 + 0.1 * jax.random.normal(keys[6], (Cout,), jnp.float32),
        "be1": 0.1 * jax.random.normal(keys[7], (Cout,), jnp.float32),
        # Conv1d #2 weight: (out_ch, out_ch, 5)
        "w2": jax.random.normal(keys[8], (Cout, Cout, 5), jnp.float32) / ((Cout * 5) ** 0.5),
        "b2": 0.1 * jax.random.normal(keys[9], (Cout,), jnp.float32),
        "g2": 1.0 + 0.1 * jax.random.normal(keys[10], (Cout,), jnp.float32),
        "be2": 0.1 * jax.random.normal(keys[11], (Cout,), jnp.float32),
    }

    out = jax.block_until_ready(up_forward(x1, x2, p))
    assert out.shape == (B, Cout, 2 * L), out.shape

    ref = jax.block_until_ready(up_reference(x1, x2, p))
    np.testing.assert_allclose(np.asarray(out), np.asarray(ref), atol=2e-2, rtol=2e-2)

    print("KERNEL_OK")
</pallas_src>

<mosaic_0001>
module attributes {stable_mosaic.version = 11 : i64} {
  func.func @up_fused_kernel(%arg0: memref<2x8x16xf32, #tpu.memory_space<vmem>>, %arg1: memref<2x8x32xf32, #tpu.memory_space<vmem>>, %arg2: memref<16x8xf32, #tpu.memory_space<vmem>>, %arg3: memref<8x1xf32, #tpu.memory_space<vmem>>, %arg4: memref<8x80xf32, #tpu.memory_space<vmem>>, %arg5: memref<8x1xf32, #tpu.memory_space<vmem>>, %arg6: memref<8x1xf32, #tpu.memory_space<vmem>>, %arg7: memref<8x1xf32, #tpu.memory_space<vmem>>, %arg8: memref<8x40xf32, #tpu.memory_space<vmem>>, %arg9: memref<8x1xf32, #tpu.memory_space<vmem>>, %arg10: memref<8x1xf32, #tpu.memory_space<vmem>>, %arg11: memref<8x1xf32, #tpu.memory_space<vmem>>, %arg12: memref<2x8x32xf32, #tpu.memory_space<vmem>>, %arg13: memref<2x16x36xf32, #tpu.memory_space<vmem>>, %arg14: memref<2x8x36xf32, #tpu.memory_space<vmem>>) attributes {dimension_semantics = [], scalar_prefetch = 0 : i64, scratch_operands = 2 : i64, tpu.core_type = #tpu.core_type<tc>} {
    %c0 = arith.constant 0 : index
    %c0_0 = arith.constant 0 : index
    %0 = vector.load %arg2[%c0, %c0_0] : memref<16x8xf32, #tpu.memory_space<vmem>>, vector<16x8xf32>
    %1 = vector.shape_cast %0 : vector<16x8xf32> to vector<1x16x8xf32>
    %2 = vector.broadcast %1 : vector<1x16x8xf32> to vector<2x16x8xf32>
    %c0_1 = arith.constant 0 : index
    %c0_2 = arith.constant 0 : index
    %3 = vector.load %arg4[%c0_1, %c0_2] : memref<8x80xf32, #tpu.memory_space<vmem>>, vector<8x80xf32>
    %4 = vector.shape_cast %3 : vector<8x80xf32> to vector<1x8x80xf32>
    %5 = vector.broadcast %4 : vector<1x8x80xf32> to vector<2x8x80xf32>
    %c0_3 = arith.constant 0 : index
    %c0_4 = arith.constant 0 : index
    %6 = vector.load %arg8[%c0_3, %c0_4] : memref<8x40xf32, #tpu.memory_space<vmem>>, vector<8x40xf32>
    %7 = vector.shape_cast %6 : vector<8x40xf32> to vector<1x8x40xf32>
    %8 = vector.broadcast %7 : vector<1x8x40xf32> to vector<2x8x40xf32>
    %c0_5 = arith.constant 0 : index
    %c0_6 = arith.constant 0 : index
    %9 = vector.load %arg3[%c0_5, %c0_6] : memref<8x1xf32, #tpu.memory_space<vmem>>, vector<8x1xf32>
    %c0_7 = arith.constant 0 : index
    %c0_8 = arith.constant 0 : index
    %10 = vector.load %arg5[%c0_7, %c0_8] : memref<8x1xf32, #tpu.memory_space<vmem>>, vector<8x1xf32>
    %c0_9 = arith.constant 0 : index
    %c0_10 = arith.constant 0 : index
    %11 = vector.load %arg6[%c0_9, %c0_10] : memref<8x1xf32, #tpu.memory_space<vmem>>, vector<8x1xf32>
    %c0_11 = arith.constant 0 : index
    %c0_12 = arith.constant 0 : index
    %12 = vector.load %arg7[%c0_11, %c0_12] : memref<8x1xf32, #tpu.memory_space<vmem>>, vector<8x1xf32>
    %c0_13 = arith.constant 0 : index
    %c0_14 = arith.constant 0 : index
    %13 = vector.load %arg9[%c0_13, %c0_14] : memref<8x1xf32, #tpu.memory_space<vmem>>, vector<8x1xf32>
    %c0_15 = arith.constant 0 : index
    %c0_16 = arith.constant 0 : index
    %14 = vector.load %arg10[%c0_15, %c0_16] : memref<8x1xf32, #tpu.memory_space<vmem>>, vector<8x1xf32>
    %c0_17 = arith.constant 0 : index
    %c0_18 = arith.constant 0 : index
    %15 = vector.load %arg11[%c0_17, %c0_18] : memref<8x1xf32, #tpu.memory_space<vmem>>, vector<8x1xf32>
    %16 = tpu.iota {dimensions = array<i32: 0>} : vector<16x32xi32>
    %17 = tpu.iota {dimensions = array<i32: 1>} : vector<16x32xi32>
    %c2_i32 = arith.constant 2 : i32
    %18 = vector.broadcast %c2_i32 : i32 to vector<16x32xi32>
    %19 = arith.muli %18, %16 : vector<16x32xi32>
    %20 = arith.cmpi eq, %17, %19 : vector<16x32xi32>
    %21 = arith.extui %20 : vector<16x32xi1> to vector<16x32xi32>
    %22 = arith.sitofp %21 : vector<16x32xi32> to vector<16x32xf32>
    %23 = vector.shape_cast %22 : vector<16x32xf32> to vector<1x16x32xf32>
    %24 = vector.broadcast %23 : vector<1x16x32xf32> to vector<2x16x32xf32>
    %c2_i32_19 = arith.constant 2 : i32
    %25 = vector.broadcast %c2_i32_19 : i32 to vector<16x32xi32>
    %26 = arith.muli %25, %16 : vector<16x32xi32>
    %c1_i32 = arith.constant 1 : i32
    %27 = vector.broadcast %c1_i32 : i32 to vector<16x32xi32>
    %28 = arith.addi %26, %27 : vector<16x32xi32>
    %29 = arith.cmpi eq, %17, %28 : vector<16x32xi32>
    %30 = arith.extui %29 : vector<16x32xi1> to vector<16x32xi32>
    %31 = arith.sitofp %30 : vector<16x32xi32> to vector<16x32xf32>
    %32 = vector.shape_cast %31 : vector<16x32xf32> to vector<1x16x32xf32>
    %33 = vector.broadcast %32 : vector<1x16x32xf32> to vector<2x16x32xf32>
    %c0_20 = arith.constant 0 : index
    %c0_21 = arith.constant 0 : index
    %c0_22 = arith.constant 0 : index
    %34 = vector.load %arg0[%c0_20, %c0_21, %c0_22] : memref<2x8x16xf32, #tpu.memory_space<vmem>>, vector<2x8x16xf32>
    "tpu.trace_start"() <{level = 10 : i32, message = "boc,bcl->bol"}> : () -> ()
    %cst = arith.constant dense<0.000000e+00> : vector<2x16x16xf32>
    %35 = tpu.matmul %2, %34, %cst {dimension_numbers = #tpu.dot_dimension_numbers<[2], [1], [1], [2], [0, 0, 0, 1, 1, 2], [0], [0]>} : vector<2x16x8xf32>, vector<2x8x16xf32>, vector<2x16x16xf32> -> vector<2x16x16xf32>
    "tpu.trace_stop"() : () -> ()
    %36 = vector.extract_strided_slice %35 {offsets = [0, 0, 0], sizes = [2, 8, 16], strides = [1, 1, 1]} : vector<2x16x16xf32> to vector<2x8x16xf32>
    "tpu.trace_start"() <{level = 10 : i32, message = "bol,blt->bot"}> : () -> ()
    %cst_23 = arith.constant dense<0.000000e+00> : vector<2x8x32xf32>
    %37 = tpu.matmul %36, %24, %cst_23 {dimension_numbers = #tpu.dot_dimension_numbers<[2], [1], [1], [2], [0, 0, 0, 1, 1, 2], [0], [0]>} : vector<2x8x16xf32>, vector<2x16x32xf32>, vector<2x8x32xf32> -> vector<2x8x32xf32>
    "tpu.trace_stop"() : () -> ()
    %38 = vector.extract_strided_slice %35 {offsets = [0, 8, 0], sizes = [2, 8, 16], strides = [1, 1, 1]} : vector<2x16x16xf32> to vector<2x8x16xf32>
    "tpu.trace_start"() <{level = 10 : i32, message = "bol,blt->bot"}> : () -> ()
    %cst_24 = arith.constant dense<0.000000e+00> : vector<2x8x32xf32>
    %39 = tpu.matmul %38, %33, %cst_24 {dimension_numbers = #tpu.dot_dimension_numbers<[2], [1], [1], [2], [0, 0, 0, 1, 1, 2], [0], [0]>} : vector<2x8x16xf32>, vector<2x16x32xf32>, vector<2x8x32xf32> -> vector<2x8x32xf32>
    "tpu.trace_stop"() : () -> ()
    %40 = arith.addf %37, %39 : vector<2x8x32xf32>
    %41 = vector.shape_cast %9 : vector<8x1xf32> to vector<1x8x1xf32>
    %42 = vector.broadcast %41 : vector<1x8x1xf32> to vector<2x8x32xf32>
    %43 = arith.addf %40, %42 : vector<2x8x32xf32>
    %cst_25 = arith.constant 0.000000e+00 : f32
    %44 = vector.broadcast %cst_25 : f32 to vector<2x16x36xf32>
    %c0_26 = arith.constant 0 : index
    %c0_27 = arith.constant 0 : index
    %c0_28 = arith.constant 0 : index
    %45 = vector.load %arg13[%c0_26, %c0_27, %c0_28] : memref<2x16x36xf32, #tpu.memory_space<vmem>>, vector<2x16x36xf32>
    tpu.vector_store %arg13[%c0_26, %c0_27, %c0_28], %44 {strides = array<i32>} : memref<2x16x36xf32, #tpu.memory_space<vmem>>, vector<2x16x36xf32>,
    %c0_29 = arith.constant 0 : index
    %c0_30 = arith.constant 0 : index
    %c2 = arith.constant 2 : index
    %46 = vector.load %arg13[%c0_29, %c0_30, %c2] : memref<2x16x36xf32, #tpu.memory_space<vmem>>, vector<2x8x32xf32>
    tpu.vector_store %arg13[%c0_29, %c0_30, %c2], %43 {strides = array<i32>} : memref<2x16x36xf32, #tpu.memory_space<vmem>>, vector<2x8x32xf32>,
    %c0_31 = arith.constant 0 : index
    %c0_32 = arith.constant 0 : index
    %c0_33 = arith.constant 0 : index
    %47 = vector.load %arg1[%c0_31, %c0_32, %c0_33] : memref<2x8x32xf32, #tpu.memory_space<vmem>>, vector<2x8x32xf32>
    %c0_34 = arith.constant 0 : index
    %c8 = arith.constant 8 : index
    %c2_35 = arith.constant 2 : index
    %48 = vector.load %arg13[%c0_34, %c8, %c2_35] : memref<2x16x36xf32, #tpu.memory_space<vmem>>, vector<2x8x32xf32>
    tpu.vector_store %arg13[%c0_34, %c8, %c2_35], %47 {strides = array<i32>} : memref<2x16x36xf32, #tpu.memory_space<vmem>>, vector<2x8x32xf32>,
    %c0_36 = arith.constant 0 : index
    %c0_37 = arith.constant 0 : index
    %c0_38 = arith.constant 0 : index
    %49 = vector.load %arg13[%c0_36, %c0_37, %c0_38] : memref<2x16x36xf32, #tpu.memory_space<vmem>>, vector<2x16x36xf32>
    %50 = vector.extract_strided_slice %49 {offsets = [0, 0, 0], sizes = [2, 16, 32], strides = [1, 1, 1]} : vector<2x16x36xf32> to vector<2x16x32xf32>
    %51 = vector.extract_strided_slice %49 {offsets = [0, 0, 1], sizes = [2, 16, 32], strides = [1, 1, 1]} : vector<2x16x36xf32> to vector<2x16x32xf32>
    %52 = vector.extract_strided_slice %49 {offsets = [0, 0, 2], sizes = [2, 16, 32], strides = [1, 1, 1]} : vector<2x16x36xf32> to vector<2x16x32xf32>
    %53 = vector.extract_strided_slice %49 {offsets = [0, 0, 3], sizes = [2, 16, 32], strides = [1, 1, 1]} : vector<2x16x36xf32> to vector<2x16x32xf32>
    %54 = vector.extract_strided_slice %49 {offsets = [0, 0, 4], sizes = [2, 16, 32], strides = [1, 1, 1]} : vector<2x16x36xf32> to vector<2x16x32xf32>
    %55 = tpu.concatenate %50, %51, %52, %53, %54 in 1 : vector<2x16x32xf32>, vector<2x16x32xf32>, vector<2x16x32xf32>, vector<2x16x32xf32>, vector<2x16x32xf32> -> vector<2x80x32xf32>
    "tpu.trace_start"() <{level = 10 : i32, message = "bos,bst->bot"}> : () -> ()
    %cst_39 = arith.constant dense<0.000000e+00> : vector<2x8x32xf32>
    %56 = tpu.matmul %5, %55, %cst_39 {dimension_numbers = #tpu.dot_dimension_numbers<[2], [1], [1], [2], [0, 0, 0, 1, 1, 2], [0], [0]>} : vector<2x8x80xf32>, vector<2x80x32xf32>, vector<2x8x32xf32> -> vector<2x8x32xf32>
    "tpu.trace_stop"() : () -> ()
    %57 = vector.shape_cast %10 : vector<8x1xf32> to vector<1x8x1xf32>
    %58 = vector.broadcast %57 : vector<1x8x1xf32> to vector<2x8x32xf32>
    %59 = arith.addf %56, %58 : vector<2x8x32xf32>
    %cst_40 = arith.constant 0.000000e+00 : f32
    %60 = vector.broadcast %cst_40 : f32 to vector<2x8x32xf32>
    %61 = arith.maximumf %59, %60 : vector<2x8x32xf32>
    %cst_41 = arith.constant dense<0.000000e+00> : vector<2x8xf32>
    %62 = vector.multi_reduction <add>, %61, %cst_41 [2] : vector<2x8x32xf32> to vector<2x8xf32>
    %63 = vector.shape_cast %62 : vector<2x8xf32> to vector<2x8x1xf32>
    %cst_42 = arith.constant dense<0.000000e+00> : vector<8x1xf32>
    %64 = vector.multi_reduction <add>, %63, %cst_42 [0] : vector<2x8x1xf32> to vector<8x1xf32>
    %65 = vector.shape_cast %64 : vector<8x1xf32> to vector<1x8x1xf32>
    %66 = arith.mulf %61, %61 : vector<2x8x32xf32>
    %cst_43 = arith.constant dense<0.000000e+00> : vector<2x8xf32>
    %67 = vector.multi_reduction <add>, %66, %cst_43 [2] : vector<2x8x32xf32> to vector<2x8xf32>
    %68 = vector.shape_cast %67 : vector<2x8xf32> to vector<2x8x1xf32>
    %cst_44 = arith.constant dense<0.000000e+00> : vector<8x1xf32>
    %69 = vector.multi_reduction <add>, %68, %cst_44 [0] : vector<2x8x1xf32> to vector<8x1xf32>
    %70 = vector.shape_cast %69 : vector<8x1xf32> to vector<1x8x1xf32>
    %cst_45 = arith.constant 1.562500e-02 : f32
    %71 = vector.broadcast %cst_45 : f32 to vector<1x8x1xf32>
    %72 = arith.mulf %65, %71 : vector<1x8x1xf32>
    %cst_46 = arith.constant 1.562500e-02 : f32
    %73 = vector.broadcast %cst_46 : f32 to vector<1x8x1xf32>
    %74 = arith.mulf %70, %73 : vector<1x8x1xf32>
    %75 = arith.mulf %72, %72 : vector<1x8x1xf32>
    %76 = arith.subf %74, %75 : vector<1x8x1xf32>
    %cst_47 = arith.constant 9.99999974E-6 : f32
    %77 = vector.broadcast %cst_47 : f32 to vector<1x8x1xf32>
    %78 = arith.addf %76, %77 : vector<1x8x1xf32>
    %79 = math.rsqrt %78 : vector<1x8x1xf32>
    %80 = vector.shape_cast %11 : vector<8x1xf32> to vector<1x8x1xf32>
    %81 = arith.mulf %79, %80 : vector<1x8x1xf32>
    %82 = arith.mulf %72, %81 : vector<1x8x1xf32>
    %83 = vector.shape_cast %12 : vector<8x1xf32> to vector<1x8x1xf32>
    %84 = arith.subf %83, %82 : vector<1x8x1xf32>
    %85 = vector.broadcast %81 : vector<1x8x1xf32> to vector<2x8x32xf32>
    %86 = arith.mulf %61, %85 : vector<2x8x32xf32>
    %87 = vector.broadcast %84 : vector<1x8x1xf32> to vector<2x8x32xf32>
    %88 = arith.addf %86, %87 : vector<2x8x32xf32>
    %cst_48 = arith.constant 0.000000e+00 : f32
    %89 = vector.broadcast %cst_48 : f32 to vector<2x8x36xf32>
    %c0_49 = arith.constant 0 : index
    %c0_50 = arith.constant 0 : index
    %c0_51 = arith.constant 0 : index
    %90 = vector.load %arg14[%c0_49, %c0_50, %c0_51] : memref<2x8x36xf32, #tpu.memory_space<vmem>>, vector<2x8x36xf32>
    tpu.vector_store %arg14[%c0_49, %c0_50, %c0_51], %89 {strides = array<i32>} : memref<2x8x36xf32, #tpu.memory_space<vmem>>, vector<2x8x36xf32>,
    %c0_52 = arith.constant 0 : index
    %c0_53 = arith.constant 0 : index
    %c2_54 = arith.constant 2 : index
    %91 = vector.load %arg14[%c0_52, %c0_53, %c2_54] : memref<2x8x36xf32, #tpu.memory_space<vmem>>, vector<2x8x32xf32>
    tpu.vector_store %arg14[%c0_52, %c0_53, %c2_54], %88 {strides = array<i32>} : memref<2x8x36xf32, #tpu.memory_space<vmem>>, vector<2x8x32xf32>,
    %c0_55 = arith.constant 0 : index
    %c0_56 = arith.constant 0 : index
    %c0_57 = arith.constant 0 : index
    %92 = vector.load %arg14[%c0_55, %c0_56, %c0_57] : memref<2x8x36xf32, #tpu.memory_space<vmem>>, vector<2x8x36xf32>
    %93 = vector.extract_strided_slice %92 {offsets = [0, 0, 0], sizes = [2, 8, 32], strides = [1, 1, 1]} : vector<2x8x36xf32> to vector<2x8x32xf32>
    %94 = vector.extract_strided_slice %92 {offsets = [0, 0, 1], sizes = [2, 8, 32], strides = [1, 1, 1]} : vector<2x8x36xf32> to vector<2x8x32xf32>
    %95 = vector.extract_strided_slice %92 {offsets = [0, 0, 2], sizes = [2, 8, 32], strides = [1, 1, 1]} : vector<2x8x36xf32> to vector<2x8x32xf32>
    %96 = vector.extract_strided_slice %92 {offsets = [0, 0, 3], sizes = [2, 8, 32], strides = [1, 1, 1]} : vector<2x8x36xf32> to vector<2x8x32xf32>
    %97 = vector.extract_strided_slice %92 {offsets = [0, 0, 4], sizes = [2, 8, 32], strides = [1, 1, 1]} : vector<2x8x36xf32> to vector<2x8x32xf32>
    %98 = tpu.concatenate %93, %94, %95, %96, %97 in 1 : vector<2x8x32xf32>, vector<2x8x32xf32>, vector<2x8x32xf32>, vector<2x8x32xf32>, vector<2x8x32xf32> -> vector<2x40x32xf32>
    "tpu.trace_start"() <{level = 10 : i32, message = "bos,bst->bot"}> : () -> ()
    %cst_58 = arith.constant dense<0.000000e+00> : vector<2x8x32xf32>
    %99 = tpu.matmul %8, %98, %cst_58 {dimension_numbers = #tpu.dot_dimension_numbers<[2], [1], [1], [2], [0, 0, 0, 1, 1, 2], [0], [0]>} : vector<2x8x40xf32>, vector<2x40x32xf32>, vector<2x8x32xf32> -> vector<2x8x32xf32>
    "tpu.trace_stop"() : () -> ()
    %100 = vector.shape_cast %13 : vector<8x1xf32> to vector<1x8x1xf32>
    %101 = vector.broadcast %100 : vector<1x8x1xf32> to vector<2x8x32xf32>
    %102 = arith.addf %99, %101 : vector<2x8x32xf32>
    %cst_59 = arith.constant 0.000000e+00 : f32
    %103 = vector.broadcast %cst_59 : f32 to vector<2x8x32xf32>
    %104 = arith.maximumf %102, %103 : vector<2x8x32xf32>
    %cst_60 = arith.constant dense<0.000000e+00> : vector<2x8xf32>
    %105 = vector.multi_reduction <add>, %104, %cst_60 [2] : vector<2x8x32xf32> to vector<2x8xf32>
    %106 = vector.shape_cast %105 : vector<2x8xf32> to vector<2x8x1xf32>
    %cst_61 = arith.constant dense<0.000000e+00> : vector<8x1xf32>
    %107 = vector.multi_reduction <add>, %106, %cst_61 [0] : vector<2x8x1xf32> to vector<8x1xf32>
    %108 = vector.shape_cast %107 : vector<8x1xf32> to vector<1x8x1xf32>
    %109 = arith.mulf %104, %104 : vector<2x8x32xf32>
    %cst_62 = arith.constant dense<0.000000e+00> : vector<2x8xf32>
    %110 = vector.multi_reduction <add>, %109, %cst_62 [2] : vector<2x8x32xf32> to vector<2x8xf32>
    %111 = vector.shape_cast %110 : vector<2x8xf32> to vector<2x8x1xf32>
    %cst_63 = arith.constant dense<0.000000e+00> : vector<8x1xf32>
    %112 = vector.multi_reduction <add>, %111, %cst_63 [0] : vector<2x8x1xf32> to vector<8x1xf32>
    %113 = vector.shape_cast %112 : vector<8x1xf32> to vector<1x8x1xf32>
    %cst_64 = arith.constant 1.562500e-02 : f32
    %114 = vector.broadcast %cst_64 : f32 to vector<1x8x1xf32>
    %115 = arith.mulf %108, %114 : vector<1x8x1xf32>
    %cst_65 = arith.constant 1.562500e-02 : f32
    %116 = vector.broadcast %cst_65 : f32 to vector<1x8x1xf32>
    %117 = arith.mulf %113, %116 : vector<1x8x1xf32>
    %118 = arith.mulf %115, %115 : vector<1x8x1xf32>
    %119 = arith.subf %117, %118 : vector<1x8x1xf32>
    %cst_66 = arith.constant 9.99999974E-6 : f32
    %120 = vector.broadcast %cst_66 : f32 to vector<1x8x1xf32>
    %121 = arith.addf %119, %120 : vector<1x8x1xf32>
    %122 = math.rsqrt %121 : vector<1x8x1xf32>
    %123 = vector.shape_cast %14 : vector<8x1xf32> to vector<1x8x1xf32>
    %124 = arith.mulf %122, %123 : vector<1x8x1xf32>
    %125 = arith.mulf %115, %124 : vector<1x8x1xf32>
    %126 = vector.shape_cast %15 : vector<8x1xf32> to vector<1x8x1xf32>
    %127 = arith.subf %126, %125 : vector<1x8x1xf32>
    %128 = vector.broadcast %124 : vector<1x8x1xf32> to vector<2x8x32xf32>
    %129 = arith.mulf %104, %128 : vector<2x8x32xf32>
    %130 = vector.broadcast %127 : vector<1x8x1xf32> to vector<2x8x32xf32>
    %131 = arith.addf %129, %130 : vector<2x8x32xf32>
    %c0_67 = arith.constant 0 : index
    %c0_68 = arith.constant 0 : index
    %c0_69 = arith.constant 0 : index
    %132 = vector.load %arg12[%c0_67, %c0_68, %c0_69] : memref<2x8x32xf32, #tpu.memory_space<vmem>>, vector<2x8x32xf32>
    tpu.vector_store %arg12[%c0_67, %c0_68, %c0_69], %131 {strides = array<i32>} : memref<2x8x32xf32, #tpu.memory_space<vmem>>, vector<2x8x32xf32>,
    return
  }
}

</mosaic_0001>

<bundles_post_ra>
// kernel: tpu_custom_call.1
= control target key start
LH: loop header
LB: loop body
LE: loop exit
PB: predicated region body
PF: predicated region fallthrough
CT: control target
= control target key end

     0   :  { %vm76_vm0 = vcmask 64512   ;;  %v53_v3 = vlaneseq  ;;  %s1606_s0 = inlined_call_operand.vmem [shape: f32[2,8,16], index: 0, kind: input, shape index: {}]   ;;  %s1607_s1 = inlined_call_operand.vmem [shape: f32[2,8,32], index: 1, kind: input, shape index: {}]   ;;  %s1608_s2 = inlined_call_operand.vmem [shape: f32[16,8], index: 2, kind: input, shape index: {}]   ;;  %s1609_s3 = inlined_call_operand.vmem [shape: f32[8,1], index: 3, kind: input, shape index: {}]   ;;  %s1610_s4 = inlined_call_operand.vmem [shape: f32[8,80], index: 4, kind: input, shape index: {}]   ;;  %s1611_s5 = inlined_call_operand.vmem [shape: f32[8,1], index: 5, kind: input, shape index: {}]   ;;  %s1612_s6 = inlined_call_operand.vmem [shape: f32[8,1], index: 6, kind: input, shape index: {}]   ;;  %s1613_s7 = inlined_call_operand.vmem [shape: f32[8,1], index: 7, kind: input, shape index: {}]   ;;  %s1614_s8 = inlined_call_operand.vmem [shape: f32[8,40], index: 8, kind: input, shape index: {}]   ;;  %s1615_s9 = inlined_call_operand.vmem [shape: f32[8,1], index: 9, kind: input, shape index: {}]   ;;  %s1616_s10 = inlined_call_operand.vmem [shape: f32[8,1], index: 10, kind: input, shape index: {}]   ;;  %s1617_s11 = inlined_call_operand.vmem [shape: f32[8,1], index: 11, kind: input, shape index: {}]   ;;  %s1618_s12 = inlined_call_operand.hbm [shape: f32[2,8,32], index: 12, kind: output, shape index: {}]  }
   0x1   :  { %v74_v0 = vld [vmem:[%s1606_s0] sm:$0xff]  ;;  %v75_v1 = vld [vmem:[%s1606_s0 + $0x8] sm:$0xff] }
   0x2   :  { %v42_v2 = vld [vmem:[%s1608_s2] sm:$0xff]  ;;  %1132 = vmatprep.subr.mxu0 %v74_v0  ;;  %1137 = vmatprep.subr.mxu1 %v75_v1  ;;  %v43_v4 = vld [vmem:[%s1608_s2 + $0x8] sm:$0xff] }
   0x3   :  { %17 = vsyncpa [#allocation5], 0  ;;  %1133 = vmatpush3.msra.mxu0 %v74_v0  ;;  %1134 = vmatprep.mubr.msk.f32.mxu0 %vm76_vm0, %v42_v2  ;;  %v54_v5 = vshrl.u32 %v53_v3, 7  ;;  %v57_v7 = vand.u32 127, %v53_v3  ;;  %v1394_v9 = vmov 0.0|0.0   ;;  %vm1396_vm4 = vmmov 0  }
   0x4   :  { %1138 = vmatpush3.msra.mxu1 %v75_v1  ;;  %1139 = vmatprep.mubr.msk.f32.mxu1 %vm76_vm0, %v42_v2  ;;  %v1395_v13 = vmov 1.0|1.0   ;;  %v1397_v14 = vmov 0.0   ;;  %v46_v15 = vld [vmem:[%s1609_s3] sm:$0xff]  ;;  %v1398_v16 = vmov 0   ;;  %vm233_vm7 = vcmask 130048  }
   0x5   :  { %1135 = vmatmul.mubr.msk.f32.vlgmr.msra.gmra.mrb[0].mxu0 %vm76_vm0, %v43_v4  ;;  %1140 = vmatmul.mubr.msk.f32.vlgmr.msra.gmra.mrb[0].mxu1 %vm76_vm0, %v43_v4  ;;  %v55_v6 = vadd.s32 8, %v54_v5  ;;  %v58_v8 = vmul.u32 2, %v54_v5  ;;  %vm533_vm9 = vcmask 293888   ;;  %s1399_s3 = smov 2   ;;  %v549_v34 = vld [vmem:[%s1607_s1] sm:$0xff]  ;;  %v550_v35 = vld [vmem:[%s1607_s1 + $0x8] sm:$0xff] }
   0x6   :  { %1245 = vmatprep.subr.bf16.mxu1 %v1394_v9  ;;  %1242 = vmatprep.subr.bf16.mxu0 %v1394_v9  ;;  %536 = vst.msk [vmem:[#allocation2 + $0x10] sm:$0xff] %vm533_vm9, %v1397_v14  ;;  %534 = vst.msk [vmem:[#allocation2] sm:$0xff] %vm533_vm9, %v1397_v14  ;;  %vm546_vm10 = vcmask 277520   ;;  %s1400_s1 = smov 127   ;;  %s1401_s15 = smov 126   ;;  %v47_v48 = vld [vmem:[%s1611_s5] sm:$0xff] }
   0x7   :  { %v59_v10 = vmul.u32 2, %v55_v6  ;;  %v66_v11 = vadd.s32 1, %v58_v8  ;;  %1146 = vmatprep.mubr.msk.f32.mxu0 %vm1396_vm4, %v1397_v14  ;;  %1153 = vmatprep.mubr.msk.f32.mxu1 %vm1396_vm4, %v1397_v14  ;;  %vm60_vm5 = vcmp.eq.s32.totalorder %v57_v7, %v58_v8  ;;  %535 = vst.msk [vmem:[#allocation2 + $0x8] sm:$0xff] %vm533_vm9, %v1397_v14  ;;  %537 = vst.msk [vmem:[#allocation2 + $0x18] sm:$0xff] %vm533_vm9, %v1397_v14  ;;  %s1402_s16 = smov 125   ;;  %s1403_s17 = smov 124  }
   0x8   :  { %1309 = vset.pattern.permute.xlu0 %v1398_v16  ;;  %1350 = vset.pattern.permute.xlu1 %v1398_v16  ;;  %808 = vst.msk [vmem:[#allocation3] sm:$0xff] %vm533_vm9, %v1397_v14  ;;  %809 = vst.msk [vmem:[#allocation3 + $0x8] sm:$0xff] %vm533_vm9, %v1397_v14  ;;  %vm622_vm11 = vcmask 654336   ;;  %vm768_vm12 = vcmask 261120   ;;  %vm853_vm13 = vcmask 326656   ;;  %s1404_s28 = smov [#allocation4]  }
   0x9   :  { %v67_v12 = vadd.s32 1, %v59_v10  ;;  %vm68_vm1 = vcmp.eq.s32.totalorder %v57_v7, %v66_v11  ;;  %528 = vperm.xlu0 %1309, %v46_v15   ;;  %vm61_vm6 = vcmp.eq.s32.totalorder %v57_v7, %v59_v10  ;;  %s1045_s0 = sshll.u32 %s1404_s28, 4  ;;  %s1046_s0 = int_to_ptr.vmem [resolvable:$true] %s1045_s0 }
   0xa   :  { %vm1249_vm8 = vmpackc.low %vm61_vm6, %vm60_vm5  ;;  %p1375_p1 = scmp.lt.s32.totalorder %s1046_s0, %s1046_s0 }
   0xb   :  { %vm69_vm2 = vcmp.eq.s32.totalorder %v57_v7, %v67_v12 }
   0xc   :  { %vm1243_vm3 = vmpackc.low %vm69_vm2, %vm68_vm1 }
   0xd   :  { %1247 = vmatpush3.bf16.msk.msra.mxu1 %vm1243_vm3, %v1395_v13  ;;  %1244 = vmatpush3.bf16.msk.msra.mxu0 %vm1243_vm3, %v1395_v13 }
   0xe   :  { %1251 = vmatprep.subr.bf16.mxu1 %v1394_v9  ;;  %1248 = vmatprep.subr.bf16.mxu0 %v1394_v9 }
  0x88   :  { %v529_v25 = vpop.permute.xlu0 %528 }
  0xd8   :  { %v1136_v17 = vpop.f32.mrb[0].mxu0  ;;  %v1141_v18 = vpop.f32.mrb[0].mxu1 }
  0xd9   :  { %v224_v19 = vpop.f32.mrb[1].mxu1  ;;  %1147 = vmatmul.mubr.msk.f32.vlgmr.msra.gmra.mrb[2].mxu0 %vm233_vm7, %v1136_v17  ;;  %1154 = vmatmul.mubr.msk.f32.vlgmr.msra.gmra.mrb[2].mxu1 %vm233_vm7, %v1141_v18  ;;  %v149_v20 = vpop.f32.mrb[1].mxu0 }
  0xda   :  { %1253 = vmatpush3.bf16.msk.msra.mxu1 %vm1249_vm8, %v1395_v13  ;;  %1250 = vmatpush3.bf16.msk.msra.mxu0 %vm1249_vm8, %v1395_v13 }
  0xdb   :  { %1160 = vmatprep.mubr.msk.f32.mxu0 %vm1396_vm4, %v1397_v14  ;;  %1167 = vmatprep.mubr.msk.f32.mxu1 %vm1396_vm4, %v1397_v14 }
  0xdc   :  { %1254 = vmatprep.subr.bf16.mxu0 %v1394_v9  ;;  %1269 = vmatprep.subr.bf16.mxu1 %v1394_v9 }
  0xdd   :  { %1161 = vmatmul.mubr.msk.f32.vlgmr.msra.gmra.mrb[4].mxu0 %vm233_vm7, %v149_v20  ;;  %1168 = vmatmul.mubr.msk.f32.vlgmr.msra.gmra.mrb[4].mxu1 %vm233_vm7, %v224_v19  ;;  %v44_v19 = vld [vmem:[%s1610_s4] sm:$0xff] }
  0xde   :  { %1190 = vmatprep.mubr.msk.f32.mxu0 %vm1396_vm4, %v1397_v14  ;;  %1213 = vmatprep.mubr.msk.f32.mxu1 %vm1396_vm4, %v1397_v14 }
 0x1ac   :  { %v376_v21 = vpop.f32.mrb[2].mxu1  ;;  %v303_v22 = vpop.f32.mrb[2].mxu0 }
 0x1ad   :  { %v1155_v23 = vpop.f32.mrb[3].mxu1  ;;  %v1148_v24 = vpop.f32.mrb[3].mxu0 }
 0x1b0   :  { %v449_v26 = vpop.f32.mrb[4].mxu0  ;;  %v522_v27 = vpop.f32.mrb[4].mxu1 }
 0x1b1   :  { %v450_v28 = vadd.f32 %v449_v26, %v303_v22  ;;  %v523_v29 = vadd.f32 %v522_v27, %v376_v21  ;;  %v1162_v30 = vpop.f32.mrb[5].mxu0  ;;  %v1169_v31 = vpop.f32.mrb[5].mxu1 }
 0x1b3   :  { %v531_v32 = vadd.f32 %v529_v25, %v450_v28  ;;  %v532_v33 = vadd.f32 %v529_v25, %v523_v29 }
 0x1b5   :  { %542 = vrot.lane.b32.xlu1 %v532_v33, %s1399_s3  ;;  %540 = vrot.lane.b32.xlu0 %v531_v32, %s1399_s3 }
 0x1b9   :  { %553 = vrot.lane.b32.xlu1 %v549_v34, %s1399_s3  ;;  %555 = vrot.lane.b32.xlu0 %v550_v35, %s1399_s3 }
 0x227   :  { %v543_v36 = vpop.permute.xlu1 %542  ;;  %v541_v37 = vpop.permute.xlu0 %540 }
 0x228   :  { %548 = vst.msk [vmem:[#allocation2 + $0x10] sm:$0xff] %vm546_vm10, %v543_v36  ;;  %547 = vst.msk [vmem:[#allocation2] sm:$0xff] %vm546_vm10, %v541_v37 }
 0x22b   :  { %v554_v38 = vpop.permute.xlu1 %553  ;;  %v556_v39 = vpop.permute.xlu0 %555 }
 0x22c   :  { %559 = vst.msk [vmem:[#allocation2 + $0x8] sm:$0xff] %vm546_vm10, %v554_v38  ;;  %560 = vst.msk [vmem:[#allocation2 + $0x18] sm:$0xff] %vm546_vm10, %v556_v39 }
 0x22f   :  { %v561_v40 = vld [vmem:[#allocation2] sm:$0xff]  ;;  %v563_v42 = vld [vmem:[#allocation2 + $0x10] sm:$0xff] }
 0x233   :  { %v562_v41 = vld [vmem:[#allocation2 + $0x8] sm:$0xff]  ;;  %v564_v43 = vld [vmem:[#allocation2 + $0x18] sm:$0xff] }
 0x234   :  { %v1310_v44 = vpack.i.bf16 %v562_v41, %v561_v40  ;;  %v1255_v45 = vpack.c.bf16 %v562_v41, %v561_v40  ;;  %v1315_v46 = vpack.i.bf16 %v564_v43, %v563_v42  ;;  %v1270_v47 = vpack.c.bf16 %v564_v43, %v563_v42 }
 0x236   :  { %1311 = vrot.lane.b32.xlu1 %v1310_v44, %s1400_s1  ;;  %1256 = vmatpush3.bf16.msra.mxu0 %v1255_v45 }
 0x237   :  { %1316 = vrot.lane.b32.xlu0 %v1315_v46, %s1400_s1  ;;  %1271 = vmatpush3.bf16.msra.mxu1 %v1270_v47 }
 0x238   :  { %1257 = vmatprep.subr.bf16.mxu0 %v1394_v9  ;;  %1272 = vmatprep.subr.bf16.mxu1 %v1394_v9 }
 0x23a   :  { %1321 = vrot.lane.b32.xlu1 %v1310_v44, %s1401_s15 }
 0x23b   :  { %1326 = vrot.lane.b32.xlu0 %v1315_v46, %s1401_s15 }
 0x23e   :  { %1331 = vrot.lane.b32.xlu1 %v1310_v44, %s1402_s16 }
 0x23f   :  { %1336 = vrot.lane.b32.xlu0 %v1315_v46, %s1402_s16 }
 0x242   :  { %1341 = vrot.lane.b32.xlu1 %v1310_v44, %s1403_s17 }
 0x243   :  { %1346 = vrot.lane.b32.xlu0 %v1315_v46, %s1403_s17  ;;  %v48_v46 = vld [vmem:[%s1612_s6] sm:$0xff] }
 0x246   :  { %619 = vperm.xlu1 %1350, %v47_v48  }
 0x2a8   :  { %v1312_v49 = vpop.permute.xlu1 %1311 }
 0x2a9   :  { %v1314_v50 = vunpack.i.h.bf16 %v1312_v49  ;;  %v1313_v51 = vunpack.i.l.bf16 %v1312_v49  ;;  %v1317_v52 = vpop.permute.xlu0 %1316  ;;  %v49_v49 = vld [vmem:[%s1613_s7] sm:$0xff] }
 0x2aa   :  { %v1319_v53 = vunpack.i.h.bf16 %v1317_v52  ;;  %v1318_v54 = vunpack.i.l.bf16 %v1317_v52 }
 0x2ab   :  { %v1258_v55 = vpack.c.bf16 %v1314_v50, %v1313_v51 }
 0x2ac   :  { %v1273_v56 = vpack.c.bf16 %v1319_v53, %v1318_v54  ;;  %v1322_v57 = vpop.permute.xlu1 %1321 }
 0x2ad   :  { %v1324_v58 = vunpack.i.h.bf16 %v1322_v57  ;;  %v1323_v59 = vunpack.i.l.bf16 %v1322_v57  ;;  %v1327_v60 = vpop.permute.xlu0 %1326  ;;  %1259 = vmatpush3.bf16.msra.mxu0 %v1258_v55 }
 0x2ae   :  { %v1329_v61 = vunpack.i.h.bf16 %v1327_v60  ;;  %v1328_v62 = vunpack.i.l.bf16 %v1327_v60  ;;  %1274 = vmatpush3.bf16.msra.mxu1 %v1273_v56  ;;  %1260 = vmatprep.subr.bf16.mxu0 %v1394_v9 }
 0x2af   :  { %v1261_v63 = vpack.c.bf16 %v1324_v58, %v1323_v59  ;;  %1275 = vmatprep.subr.bf16.mxu1 %v1394_v9 }
 0x2b0   :  { %v1276_v0 = vpack.c.bf16 %v1329_v61, %v1328_v62  ;;  %v1332_v1 = vpop.permute.xlu1 %1331 }
 0x2b1   :  { %v1334_v2 = vunpack.i.h.bf16 %v1332_v1  ;;  %v1333_v3 = vunpack.i.l.bf16 %v1332_v1  ;;  %v1337_v4 = vpop.permute.xlu0 %1336  ;;  %1262 = vmatpush3.bf16.msra.mxu0 %v1261_v63  ;;  %v50_v63 = vld [vmem:[%s1615_s9] sm:$0xff] }
 0x2b2   :  { %v1339_v5 = vunpack.i.h.bf16 %v1337_v4  ;;  %v1338_v6 = vunpack.i.l.bf16 %v1337_v4  ;;  %1277 = vmatpush3.bf16.msra.mxu1 %v1276_v0  ;;  %1263 = vmatprep.subr.bf16.mxu0 %v1394_v9 }
 0x2b3   :  { %v1264_v7 = vpack.c.bf16 %v1334_v2, %v1333_v3  ;;  %1278 = vmatprep.subr.bf16.mxu1 %v1394_v9 }
 0x2b4   :  { %v1279_v8 = vpack.c.bf16 %v1339_v5, %v1338_v6  ;;  %v1342_v10 = vpop.permute.xlu1 %1341 }
 0x2b5   :  { %v1344_v11 = vunpack.i.h.bf16 %v1342_v10  ;;  %v1343_v12 = vunpack.i.l.bf16 %v1342_v10  ;;  %v1347_v13 = vpop.permute.xlu0 %1346  ;;  %1265 = vmatpush3.bf16.msra.mxu0 %v1264_v7 }
 0x2b6   :  { %v1349_v15 = vunpack.i.h.bf16 %v1347_v13  ;;  %v1348_v16 = vunpack.i.l.bf16 %v1347_v13  ;;  %1280 = vmatpush3.bf16.msra.mxu1 %v1279_v8  ;;  %1266 = vmatprep.subr.bf16.mxu0 %v1394_v9 }
 0x2b7   :  { %v1267_v17 = vpack.c.bf16 %v1344_v11, %v1343_v12  ;;  %1281 = vmatprep.subr.bf16.mxu1 %v1394_v9 }
 0x2b8   :  { %v1282_v18 = vpack.c.bf16 %v1349_v15, %v1348_v16  ;;  %v45_v15 = vld [vmem:[%s1614_s8] sm:$0xff] }
 0x2b9   :  { %1268 = vmatpush3.bf16.msra.mxu0 %v1267_v17 }
 0x2ba   :  { %1283 = vmatpush3.bf16.msra.mxu1 %v1282_v18  ;;  %1284 = vmatprep.subr.bf16.mxu0 %v1394_v9 }
 0x2bb   :  { %1290 = vmatprep.subr.bf16.mxu1 %v1394_v9 }
 0x2bc   :  { %1191 = vmatmul.mubr.msk.f32.vlgmr.msra.gmra.mrb[6].mxu0 %vm622_vm11, %v44_v19 }
 0x2bd   :  { %1214 = vmatmul.mubr.msk.f32.vlgmr.msra.gmra.mrb[6].mxu1 %vm622_vm11, %v44_v19  ;;  %1226 = vmatprep.mubr.msk.f32.mxu0 %vm1396_vm4, %v1397_v14 }
 0x2be   :  { %1239 = vmatprep.mubr.msk.f32.mxu1 %vm1396_vm4, %v1397_v14 }
 0x2c5   :  { %v620_v20 = vpop.permute.xlu1 %619 }
 0x38f   :  { %v692_v21 = vpop.f32.mrb[6].mxu0 }
 0x390   :  { %v693_v22 = vadd.f32 %v692_v21, %v620_v20  ;;  %v762_v23 = vpop.f32.mrb[6].mxu1  ;;  %v1192_v24 = vpop.f32.mrb[7].mxu0 }
 0x391   :  { %v763_v25 = vadd.f32 %v762_v23, %v620_v20  ;;  %v1215_v26 = vpop.f32.mrb[7].mxu1 }
 0x392   :  { %v766_v27 = vmax.f32 %v693_v22, 0.0 }
 0x393   :  { %v767_v28 = vmax.f32 %v763_v25, 0.0 }
 0x394   :  { %v769_v29 = vsel %vm768_vm12, %v766_v27, 0.0  ;;  %v776_v30 = vmul.f32 %v766_v27, %v766_v27 }
 0x395   :  { %v772_v31 = vsel %vm768_vm12, %v767_v28, 0.0  ;;  %770 = vadd.xlane.f32.xlu0 %v769_v29  ;;  %v777_v33 = vmul.f32 %v767_v28, %v767_v28 }
 0x396   :  { %773 = vadd.xlane.f32.xlu1 %v772_v31  ;;  %v778_v32 = vsel %vm768_vm12, %v776_v30, 0.0 }
 0x397   :  { %v781_v34 = vsel %vm768_vm12, %v777_v33, 0.0 }
 0x399   :  { %779 = vadd.xlane.f32.xlu0 %v778_v32 }
 0x39d   :  { %782 = vadd.xlane.f32.xlu0 %v781_v34 }
 0x422   :  { %v771_v35 = vpop.xlane.xlu0 %770 }
 0x423   :  { %v774_v36 = vpop.xlane.xlu1 %773 }
 0x424   :  { %v775_v37 = vadd.f32 %v774_v36, %v771_v35 }
 0x426   :  { %v780_v38 = vpop.xlane.xlu0 %779  ;;  %v785_v39 = vmul.f32 0.015625, %v775_v37 }
 0x428   :  { %v787_v42 = vmul.f32 %v785_v39, %v785_v39 }
 0x42a   :  { %v783_v40 = vpop.xlane.xlu0 %782 }
 0x42b   :  { %v784_v41 = vadd.f32 %v783_v40, %v780_v38 }
 0x42d   :  { %v786_v43 = vmul.f32 0.015625, %v784_v41 }
 0x42f   :  { %v788_v44 = vsub.f32 %v786_v43, %v787_v42  ;;  %v51_v42 = vld [vmem:[%s1616_s10] sm:$0xff]  ;;  %s1370_s10 = scalar_lea.vmem %s1046_s0, 256 }
 0x430   :  { %p1371_p0 = scmp.ne.s32.totalorder %s1046_s0, %s1370_s10  ;;  %p1376_p2 = scmp.lt.s32.totalorder %s1370_s10, %s1370_s10 }
 0x431   :  { %v789_v45 = vadd.f32 1e-05, %v788_v44 }
 0x432   :  { %p1377_p3 = por %p1376_p2, %p1375_p1 }
 0x433   :  { %1366 = vrsqrt.f32 %v789_v45  ;;  %v52_v45 = vld [vmem:[%s1617_s11] sm:$0xff] }
 0x434   :  { %p1378_p4 = pnand %p1377_p3, %p1371_p0 }
 0x43d   :  { %v1367_v47 = vpop.eup %1366 }
 0x43e   :  { %v791_v48 = vmul.f32 %v1367_v47, %v48_v46 }
 0x440   :  { %796 = vperm.xlu1 %1350, %v791_v48   ;;  %v792_v50 = vmul.f32 %v791_v48, %v785_v39 }
 0x442   :  { %v793_v51 = vsub.f32 %v49_v49, %v792_v50 }
 0x444   :  { %803 = vperm.xlu0 %1309, %v793_v51  }
 0x4bf   :  { %v797_v52 = vpop.permute.xlu1 %796 }
 0x4c0   :  { %v799_v53 = vmul.f32 %v797_v52, %v766_v27  ;;  %v800_v56 = vmul.f32 %v797_v52, %v767_v28 }
 0x4c3   :  { %v804_v54 = vpop.permute.xlu0 %803 }
 0x4c4   :  { %v806_v55 = vadd.f32 %v804_v54, %v799_v53  ;;  %v807_v57 = vadd.f32 %v804_v54, %v800_v56 }
 0x4c6   :  { %812 = vrot.lane.b32.xlu1 %v806_v55, %s1399_s3 }
 0x4ca   :  { %814 = vrot.lane.b32.xlu1 %v807_v57, %s1399_s3 }
 0x538   :  { %v813_v58 = vpop.permute.xlu1 %812 }
 0x539   :  { %818 = vst.msk [vmem:[#allocation3] sm:$0xff] %vm546_vm10, %v813_v58 }
 0x53c   :  { %v815_v59 = vpop.permute.xlu1 %814 }
 0x53d   :  { %819 = vst.msk [vmem:[#allocation3 + $0x8] sm:$0xff] %vm546_vm10, %v815_v59 }
 0x540   :  { %v820_v60 = vld [vmem:[#allocation3] sm:$0xff] }
 0x544   :  { %v821_v61 = vld [vmem:[#allocation3 + $0x8] sm:$0xff] }
 0x545   :  { %v1356_v62 = vpack.i.bf16 %v821_v61, %v820_v60 }
 0x547   :  { %1357 = vrot.lane.b32.xlu1 %v1356_v62, %s1401_s15  ;;  %1352 = vrot.lane.b32.xlu0 %v1356_v62, %s1400_s1 }
 0x54b   :  { %842 = vrot.lane.b32.xlu1 %v820_v60, %s1403_s17  ;;  %1362 = vrot.lane.b32.xlu0 %v1356_v62, %s1402_s16 }
 0x54f   :  { %850 = vperm.xlu1 %1350, %v50_v63   ;;  %844 = vrot.lane.b32.xlu0 %v821_v61, %s1403_s17 }
 0x5b9   :  { %v1353_v0 = vpop.permute.xlu0 %1352  ;;  %v1358_v3 = vpop.permute.xlu1 %1357 }
 0x5ba   :  { %v1355_v1 = vunpack.i.h.bf16 %v1353_v0  ;;  %v1354_v2 = vunpack.i.l.bf16 %v1353_v0  ;;  %v1360_v7 = vunpack.i.h.bf16 %v1358_v3  ;;  %v1359_v8 = vunpack.i.l.bf16 %v1358_v3 }
 0x5bc   :  { %v1291_v4 = vpack.c.bf16 %v1355_v1, %v821_v61  ;;  %v1285_v5 = vpack.c.bf16 %v1354_v2, %v820_v60 }
 0x5bd   :  { %v1363_v6 = vpop.permute.xlu0 %1362  ;;  %v843_v16 = vpop.permute.xlu1 %842 }
 0x5be   :  { %v1365_v10 = vunpack.i.h.bf16 %v1363_v6  ;;  %v1364_v11 = vunpack.i.l.bf16 %v1363_v6  ;;  %1286 = vmatpush3.bf16.msra.mxu0 %v1285_v5  ;;  %1292 = vmatpush3.bf16.msra.mxu1 %v1291_v4 }
 0x5bf   :  { %1287 = vmatprep.subr.bf16.mxu0 %v1394_v9  ;;  %1293 = vmatprep.subr.bf16.mxu1 %v1394_v9 }
 0x5c0   :  { %v1294_v12 = vpack.c.bf16 %v1365_v10, %v1360_v7  ;;  %v1288_v13 = vpack.c.bf16 %v1364_v11, %v1359_v8 }
 0x5c1   :  { %v845_v17 = vpop.permute.xlu0 %844 }
 0x5c2   :  { %1289 = vmatpush3.bf16.msra.mxu0 %v1288_v13  ;;  %1295 = vmatpush3.bf16.msra.mxu1 %v1294_v12 }
 0x5c3   :  { %1224 = vmatprep.subr.mxu0 %v1397_v14  ;;  %1237 = vmatprep.subr.mxu1 %v1397_v14 }
 0x5c6   :  { %1225 = vmatpush3.msra.mxu0 %v843_v16  ;;  %1238 = vmatpush3.msra.mxu1 %v845_v17 }
 0x5c7   :  { %1227 = vmatmul.mubr.msk.f32.vlgmr.msra.gmra.mrb[8].mxu0 %vm853_vm13, %v45_v15  ;;  %1240 = vmatmul.mubr.msk.f32.vlgmr.msra.gmra.mrb[8].mxu1 %vm853_vm13, %v45_v15 }
 0x5ce   :  { %v851_v9 = vpop.permute.xlu1 %850 }
 0x69a   :  { %v923_v18 = vpop.f32.mrb[8].mxu0  ;;  %v993_v19 = vpop.f32.mrb[8].mxu1 }
 0x69b   :  { %v924_v20 = vadd.f32 %v923_v18, %v851_v9  ;;  %v994_v21 = vadd.f32 %v993_v19, %v851_v9  ;;  %v1228_v22 = vpop.f32.mrb[9].mxu0  ;;  %v1241_v23 = vpop.f32.mrb[9].mxu1 }
 0x69d   :  { %v997_v24 = vmax.f32 %v924_v20, 0.0  ;;  %v998_v14 = vmax.f32 %v994_v21, 0.0 }
 0x69f   :  { %v1002_v25 = vsel %vm768_vm12, %v998_v14, 0.0  ;;  %v999_v26 = vsel %vm768_vm12, %v997_v24, 0.0  ;;  %v1006_v27 = vmul.f32 %v997_v24, %v997_v24  ;;  %v1007_v29 = vmul.f32 %v998_v14, %v998_v14 }
 0x6a0   :  { %1003 = vadd.xlane.f32.xlu1 %v1002_v25  ;;  %1000 = vadd.xlane.f32.xlu0 %v999_v26 }
 0x6a1   :  { %v1008_v28 = vsel %vm768_vm12, %v1006_v27, 0.0  ;;  %v1011_v30 = vsel %vm768_vm12, %v1007_v29, 0.0 }
 0x6a4   :  { %1009 = vadd.xlane.f32.xlu0 %v1008_v28 }
 0x6a8   :  { %1012 = vadd.xlane.f32.xlu0 %v1011_v30 }
 0x72d   :  { %v1004_v31 = vpop.xlane.xlu1 %1003  ;;  %v1001_v32 = vpop.xlane.xlu0 %1000 }
 0x72e   :  { %v1005_v33 = vadd.f32 %v1004_v31, %v1001_v32 }
 0x730   :  { %v1015_v35 = vmul.f32 0.015625, %v1005_v33 }
 0x731   :  { %v1010_v34 = vpop.xlane.xlu0 %1009 }
 0x732   :  { %v1017_v38 = vmul.f32 %v1015_v35, %v1015_v35 }
 0x735   :  { %v1013_v36 = vpop.xlane.xlu0 %1012 }
 0x736   :  { %v1014_v37 = vadd.f32 %v1013_v36, %v1010_v34 }
 0x738   :  { %v1016_v39 = vmul.f32 0.015625, %v1014_v37 }
 0x73a   :  { %v1018_v40 = vsub.f32 %v1016_v39, %v1017_v38 }
 0x73c   :  { %v1019_v41 = vadd.f32 1e-05, %v1018_v40 }
 0x73e   :  { %1368 = vrsqrt.f32 %v1019_v41 }
 0x748   :  { %v1369_v43 = vpop.eup %1368 }
 0x749   :  { %v1021_v44 = vmul.f32 %v1369_v43, %v51_v42 }
 0x74b   :  { %1026 = vperm.xlu1 %1350, %v1021_v44   ;;  %v1022_v46 = vmul.f32 %v1021_v44, %v1015_v35 }
 0x74d   :  { %v1023_v47 = vsub.f32 %v52_v45, %v1022_v46 }
 0x74f   :  { %1033 = vperm.xlu0 %1309, %v1023_v47  }
 0x7ca   :  { %v1027_v48 = vpop.permute.xlu1 %1026 }
 0x7cb   :  { %v1029_v49 = vmul.f32 %v1027_v48, %v997_v24  ;;  %v1030_v50 = vmul.f32 %v1027_v48, %v998_v14 }
 0x7ce   :  { %v1034_v51 = vpop.permute.xlu0 %1033 }
 0x7cf   :  { %v1036_v52 = vadd.f32 %v1034_v51, %v1029_v49  ;;  %v1037_v53 = vadd.f32 %v1034_v51, %v1030_v50 }
 0x7d1   :  { %1038 = vst.msk [vmem:[#allocation4] sm:$0xff] %vm768_vm12, %v1036_v52  ;;  %1039 = vst.msk [vmem:[#allocation4 + $0x8] sm:$0xff] %vm768_vm12, %v1037_v53 }
 0x7d2   :  { %1381 = shalt.err (!%p1378_p4)
}
 0x7d3   :  { %s1382_s3 = scalar_lea.hbm %s1618_s12, 256 }
 0x7d4   :  { %p1383_p5 = scmp.ne.s32.totalorder %s1618_s12, %s1382_s3  ;;  %p1386_p6 = scmp.lt.u32.totalorder %s1382_s3, %s1618_s12 }
 0x7d6   :  { %p1388_p7 = pnand %p1386_p6, %p1383_p5 }
 0x7d8   :  { %1391 = shalt.err (!%p1388_p7)
}
 0x7d9   :  { %s1405_s1 = smov 128   ;;  %s1406_s15 = smov 8  }
 0x7da   :  { %1051 = dma.vmem_to_hbm [thread:$0]  %s1046_s0, 256, %s1618_s12, [#allocation5], %s1405_s1, %s1405_s1, %s1406_s15  }
 0x7db   :  { %1392 = dma.done.wait [#allocation5], 256  }
 0x7dc   :  { %1393 = vsyncadd [#allocation5], 4294967040 }
 0x7dd   :  { %1055 = vsyncpa [#allocation5], 1 }

</bundles_post_ra>
